<compile_context>
chip_gen: v5e
topology: v5e:2x2
jax: 0.10.0
libtpu: 0.0.40
codegen_flags: <defaults>
</compile_context>

<pallas_src>
import functools

import jax
import jax.numpy as jnp
from jax.experimental import pallas as pl
from jax.experimental.pallas import tpu as pltpu


def _round_up(x, m):
    return (x + m - 1) // m * m


def _pick_images_per_block(batch, in_bytes_per_img, out_bytes_per_img, budget_bytes):
    """Largest image count per grid step that (a) keeps >= 2 grid steps when
    batch >= 2 (both v7x TensorCores busy), (b) fits a conservative VMEM budget
    with double-buffered in/out blocks, and (c) divides the batch exactly."""
    if batch <= 1:
        return 1
    ipb = max(1, batch // 2)
    per_img = 2 * (in_bytes_per_img + out_bytes_per_img)   # double-buffered in + out
    ipb = min(ipb, max(1, budget_bytes // max(per_img, 1)))
    while batch % ipb:
        ipb -= 1
    return ipb


def _conv_bn_relu_kernel(x_ref, w_ref, ss_ref, o_ref, *, shifts, np_rows, imgs):
    # x_ref : (imgs, Mb, 4*Cin)   bf16  flattened s2d image rows (+ zero halo rows)
    # w_ref : (16*Cin, Cout_p)    bf16  2x2-conv taps stacked along K (tap-major)
    # ss_ref: (2, Cout_p)         f32   row 0 = BN scale, row 1 = BN shift
    # o_ref : (imgs, Np, Cout_p)  bf16  flat output rows (scrap column dropped in wrapper)
    parts = []
    for b in range(imgs):                                    # static unroll, imgs is small
        x = x_ref[b]                                         # (Mb, 4*Cin) bf16, one load
        # 4-tap gather as shifted bf16 row-slices, lane-concatenated -> (Np, 16*Cin).
        parts.append(jnp.concatenate([x[s:s + np_rows, :] for s in shifts], axis=-1))
    x4 = parts[0] if imgs == 1 else jnp.concatenate(parts, axis=0)    # (imgs*Np, 16*Cin)
    # One bf16 MXU contraction (K = 16*Cin), f32 accumulation.
    y = jnp.dot(x4, w_ref[...], preferred_element_type=jnp.float32)   # (imgs*Np, Cout_p)
    y = jnp.maximum(y * ss_ref[0:1, :] + ss_ref[1:2, :], 0.0)         # BN affine + ReLU, f32
    for b in range(imgs):                      # Np % 8 == 0 -> aligned f32 row slices
        o_ref[b, :, :] = y[b * np_rows:(b + 1) * np_rows, :].astype(o_ref.dtype)


def standard_conv_forward(x_nchw, w_oihw, gamma, beta, running_mean, running_var,
                          *, stride=2, eps=1e-5, compute_dtype=jnp.bfloat16,
                          images_per_block=None):
    assert stride == 2, "kernel is specialised for the module's stride=2"
    B, Cin, H, W = x_nchw.shape
    Cout = w_oihw.shape[0]
    KH = KW = 3
    Ho = (H + 2 - KH) // stride + 1
    Wo = (W + 2 - KW) // stride + 1
    Hs, Ws = Ho + 1, Wo + 1                      # space-to-depth spatial extent
    Cout_p = _round_up(Cout, 128)                # lane-dense weight / output
    Np = _round_up(Ho * Ws, 8)                   # flat output rows per image
    Mb = _round_up(Np + Ws + 1, 8)               # input rows per image incl. tap halo (zero pad)

    if images_per_block is None:
        images_per_block = _pick_images_per_block(
            B, Mb * 4 * Cin * 2, Np * Cout_p * 2, budget_bytes=40 * 1024 * 1024)
    assert B % images_per_block == 0, (B, images_per_block)
    n_steps = B // images_per_block

    # ---- glue: pure layout (XLA fuses into ~one copy of the input) ----
    x_nhwc = jnp.transpose(x_nchw, (0, 2, 3, 1))
    Hp, Wp = 2 * Hs, 2 * Ws
    x_pad = jnp.pad(x_nhwc, ((0, 0), (1, Hp - H - 1), (1, Wp - W - 1), (0, 0)))
    # 2x2 space-to-depth: x_s2d[b, i*Ws + j, (dh, dw, c)] = x_pad[b, 2i+dh, 2j+dw, c]
    x_s2d = (x_pad.reshape(B, Hs, 2, Ws, 2, Cin)
             .transpose(0, 1, 3, 2, 4, 5)
             .reshape(B, Hs * Ws, 4 * Cin))
    x_flat = jnp.pad(x_s2d, ((0, 0), (0, Mb - Hs * Ws), (0, 0))).astype(compute_dtype)

    # weight: OIHW -> zero-embedded 2x2-s2d weight, taps stacked along K:
    # K index = tap*(4*Cin) + dh*2*Cin + dw*Cin + c  (matches x4's lane-concat order).
    w_k = jnp.transpose(w_oihw, (2, 3, 1, 0))                      # (3, 3, Cin, Cout)
    w4 = jnp.pad(w_k, ((0, 1), (0, 1), (0, 0), (0, 0)))            # (4, 4, Cin, Cout); kh/kw=3 taps = 0
    w2 = (w4.reshape(2, 2, 2, 2, Cin, Cout)                        # (a, dh, b, dw, c, o)
          .transpose(0, 2, 1, 3, 4, 5)                             # (a, b, dh, dw, c, o)
          .reshape(16 * Cin, Cout))
    w2 = jnp.pad(w2, ((0, 0), (0, Cout_p - Cout))).astype(compute_dtype)

    # BN (inference) folded to per-channel scale/shift, packed into ONE operand.
    scale = gamma / jnp.sqrt(running_var + eps)
    shift = beta - running_mean * scale
    ss = jnp.pad(jnp.stack([scale, shift], 0).astype(jnp.float32),
                 ((0, 0), (0, Cout_p - Cout)))                     # (2, Cout_p)

    shifts = (0, 1, Ws, Ws + 1)   # flat-row offsets of the 2x2 conv taps

    kernel = functools.partial(_conv_bn_relu_kernel, shifts=shifts,
                               np_rows=Np, imgs=images_per_block)
    out_flat = pl.pallas_call(
        kernel,
        out_shape=jax.ShapeDtypeStruct((B, Np, Cout_p), compute_dtype),   # bf16 writeback
        grid_spec=pltpu.PrefetchScalarGridSpec(
            num_scalar_prefetch=0,
            grid=(n_steps,),
            in_specs=[
                pl.BlockSpec((images_per_block, Mb, 4 * Cin), lambda g: (g, 0, 0)),
                # w / ss index maps are constant => Pallas never re-DMAs them across
                # grid steps.  TODO(synk): single-buffer them (pipeline_mode=
                # pl.Buffered(1)) once production Cin/Cout makes VMEM tight.
                pl.BlockSpec((16 * Cin, Cout_p), lambda g: (0, 0)),
                pl.BlockSpec((2, Cout_p), lambda g: (0, 0)),
            ],
            out_specs=pl.BlockSpec((images_per_block, Np, Cout_p), lambda g: (g, 0, 0)),
        ),
        compiler_params=pltpu.CompilerParams(
            dimension_semantics=("parallel",),   # batch axis -> both TCs on v7x
            vmem_limit_bytes=48 * 1024 * 1024,   # tiles sized against v7x's 64 MiB VMEM
        ),
    )(x_flat, w2, ss)

    # drop the scrap column (j == Wo) and the Cout lane padding; back to NCHW.
    out = out_flat[:, :Ho * Ws, :Cout].reshape(B, Ho, Ws, Cout)[:, :, :Wo, :]
    # TODO(synk): if the consumer accepts NHWC, return `out` here and skip the transpose.
    return jnp.transpose(out, (0, 3, 1, 2)).astype(x_nchw.dtype)


def _reference_forward(x_nchw, w_oihw, gamma, beta, running_mean, running_var,
                       *, stride=2, eps=1e-5):
    y = jax.lax.conv_general_dilated(
        x_nchw, w_oihw, window_strides=(stride, stride),
        padding=((1, 1), (1, 1)),
        dimension_numbers=("NCHW", "OIHW", "NCHW"))
    scale = (gamma / jnp.sqrt(running_var + eps))[None, :, None, None]
    shift = (beta - running_mean * gamma / jnp.sqrt(running_var + eps))[None, :, None, None]
    return jnp.maximum(y * scale + shift, 0.0)


if __name__ == "__main__":
    key = jax.random.PRNGKey(0)
    k_x, k_w, k_g, k_b = jax.random.split(key, 4)

    B, Cin, H, W = 2, 4, 16, 16
    Cout = 8

    x = jax.random.normal(k_x, (B, Cin, H, W), dtype=jnp.float32)
    # deterministic "init": conv weight ~ N(0, 0.1); BN gamma ~ 1, beta ~ 0,
    # running stats at PyTorch defaults (mean=0, var=1).
    w = 0.1 * jax.random.normal(k_w, (Cout, Cin, 3, 3), dtype=jnp.float32)
    gamma = 1.0 + 0.1 * jax.random.normal(k_g, (Cout,), dtype=jnp.float32)
    beta = 0.1 * jax.random.normal(k_b, (Cout,), dtype=jnp.float32)
    running_mean = jnp.zeros((Cout,), dtype=jnp.float32)
    running_var = jnp.ones((Cout,), dtype=jnp.float32)

    fwd = jax.jit(standard_conv_forward)
    out = jax.block_until_ready(fwd(x, w, gamma, beta, running_mean, running_var))

    ref = _reference_forward(x, w, gamma, beta, running_mean, running_var)
    assert out.shape == (B, Cout, H // 2, W // 2), out.shape
    # bf16 operands + bf16 writeback (f32 accumulation) => bf16-level tolerance.
    max_err = float(jnp.max(jnp.abs(out - ref)))
    assert jnp.allclose(out, ref, atol=4e-2, rtol=4e-2), max_err

    print("KERNEL_OK")
</pallas_src>

<mosaic_0001>
module attributes {stable_mosaic.version = 11 : i64} {
  func.func @_conv_bn_relu_kernel(%arg0: i32, %arg1: memref<1x88x16xbf16, #tpu.memory_space<vmem>>, %arg2: memref<64x128xbf16, #tpu.memory_space<vmem>>, %arg3: memref<2x128xf32, #tpu.memory_space<vmem>>, %arg4: memref<1x72x128xbf16, #tpu.memory_space<vmem>>) attributes {dimension_semantics = [#tpu.dimension_semantics<parallel>], iteration_bounds = array<i64: 2>, scalar_prefetch = 0 : i64, scratch_operands = 0 : i64, tpu.core_type = #tpu.core_type<tc>, window_params = [{transform_indices = @transform_0, window_bounds = array<i64: 1, 88, 16>}, {pipeline_mode = #tpu.pipeline_mode<synchronous>, transform_indices = @transform_1, window_bounds = array<i64: 64, 128>}, {pipeline_mode = #tpu.pipeline_mode<synchronous>, transform_indices = @transform_2, window_bounds = array<i64: 2, 128>}, {transform_indices = @transform_3, window_bounds = array<i64: 1, 72, 128>}]} {
    %c0 = arith.constant 0 : index
    %c0_0 = arith.constant 0 : index
    %c0_1 = arith.constant 0 : index
    %0 = vector.load %arg1[%c0, %c0_0, %c0_1] : memref<1x88x16xbf16, #tpu.memory_space<vmem>>, vector<1x88x16xbf16>
    %1 = vector.shape_cast %0 : vector<1x88x16xbf16> to vector<88x16xbf16>
    %2 = vector.extract_strided_slice %1 {offsets = [0, 0], sizes = [72, 16], strides = [1, 1]} : vector<88x16xbf16> to vector<72x16xbf16>
    %3 = vector.extract_strided_slice %1 {offsets = [1, 0], sizes = [72, 16], strides = [1, 1]} : vector<88x16xbf16> to vector<72x16xbf16>
    %4 = vector.extract_strided_slice %1 {offsets = [9, 0], sizes = [72, 16], strides = [1, 1]} : vector<88x16xbf16> to vector<72x16xbf16>
    %5 = vector.extract_strided_slice %1 {offsets = [10, 0], sizes = [72, 16], strides = [1, 1]} : vector<88x16xbf16> to vector<72x16xbf16>
    %6 = tpu.concatenate %2, %3, %4, %5 in 1 : vector<72x16xbf16>, vector<72x16xbf16>, vector<72x16xbf16>, vector<72x16xbf16> -> vector<72x64xbf16>
    %c0_2 = arith.constant 0 : index
    %c0_3 = arith.constant 0 : index
    %7 = vector.load %arg2[%c0_2, %c0_3] : memref<64x128xbf16, #tpu.memory_space<vmem>>, vector<64x128xbf16>
    %cst = arith.constant dense<0.000000e+00> : vector<72x128xf32>
    %8 = tpu.matmul %6, %7, %cst {dimension_numbers = #tpu.dot_dimension_numbers<[1], [0], [0], [1], [0, 0, 1, 1], [], []>} : vector<72x64xbf16>, vector<64x128xbf16>, vector<72x128xf32> -> vector<72x128xf32>
    %c0_4 = arith.constant 0 : index
    %c0_5 = arith.constant 0 : index
    %9 = vector.load %arg3[%c0_4, %c0_5] : memref<2x128xf32, #tpu.memory_space<vmem>>, vector<1x128xf32>
    %10 = vector.broadcast %9 : vector<1x128xf32> to vector<72x128xf32>
    %11 = arith.mulf %8, %10 : vector<72x128xf32>
    %c1 = arith.constant 1 : index
    %c0_6 = arith.constant 0 : index
    %12 = vector.load %arg3[%c1, %c0_6] : memref<2x128xf32, #tpu.memory_space<vmem>>, vector<1x128xf32>
    %13 = vector.broadcast %12 : vector<1x128xf32> to vector<72x128xf32>
    %14 = arith.addf %11, %13 : vector<72x128xf32>
    %cst_7 = arith.constant 0.000000e+00 : f32
    %15 = vector.broadcast %cst_7 : f32 to vector<72x128xf32>
    %16 = arith.maximumf %14, %15 : vector<72x128xf32>
    %17 = arith.truncf %16 : vector<72x128xf32> to vector<72x128xbf16>
    %c0_8 = arith.constant 0 : index
    %c0_9 = arith.constant 0 : index
    %c0_10 = arith.constant 0 : index
    %18 = vector.load %arg4[%c0_8, %c0_9, %c0_10] : memref<1x72x128xbf16, #tpu.memory_space<vmem>>, vector<1x72x128xbf16>
    %19 = vector.shape_cast %18 : vector<1x72x128xbf16> to vector<72x128xbf16>
    %20 = vector.shape_cast %17 : vector<72x128xbf16> to vector<1x72x128xbf16>
    tpu.vector_store %arg4[%c0_8, %c0_9, %c0_10], %20 {strides = array<i32>} : memref<1x72x128xbf16, #tpu.memory_space<vmem>>, vector<1x72x128xbf16>,
    return
  }
  func.func @transform_0(%arg0: i32) -> (i32, i32, i32) {
    %c0_i32 = arith.constant 0 : i32
    %c0_i32_0 = arith.constant 0 : i32
    %c0_i32_1 = arith.constant 0 : i32
    return %arg0, %c0_i32, %c0_i32_0 : i32, i32, i32
  }
  func.func @transform_1(%arg0: i32) -> (i32, i32) {
    %c0_i32 = arith.constant 0 : i32
    %c0_i32_0 = arith.constant 0 : i32
    %c0_i32_1 = arith.constant 0 : i32
    return %c0_i32, %c0_i32_0 : i32, i32
  }
  func.func @transform_2(%arg0: i32) -> (i32, i32) {
    %c0_i32 = arith.constant 0 : i32
    %c0_i32_0 = arith.constant 0 : i32
    %c0_i32_1 = arith.constant 0 : i32
    return %c0_i32, %c0_i32_0 : i32, i32
  }
  func.func @transform_3(%arg0: i32) -> (i32, i32, i32) {
    %c0_i32 = arith.constant 0 : i32
    %c0_i32_0 = arith.constant 0 : i32
    %c0_i32_1 = arith.constant 0 : i32
    return %arg0, %c0_i32, %c0_i32_0 : i32, i32, i32
  }
}

</mosaic_0001>

<bundles_post_ra>
// kernel: standard_conv_forward.1
= control target key start
LH: loop header
LB: loop body
LE: loop exit
PB: predicated region body
PF: predicated region fallthrough
CT: control target
= control target key end

     0   :  { %s716_s12 = smov 0   ;;  %s864_s0 = inlined_call_operand.vmem [shape: bf16[2,88,16], index: 0, kind: input, shape index: {}]   ;;  %s865_s1 = inlined_call_operand.vmem [shape: bf16[64,128], index: 1, kind: input, shape index: {}]   ;;  %s866_s2 = inlined_call_operand.vmem [shape: f32[2,128], index: 2, kind: input, shape index: {}]   ;;  %s867_s3 = inlined_call_operand.vmem [shape: bf16[2,72,128], index: 3, kind: output, shape index: {}]  }
   0x1 LB: > { %s549_s13 = sadd.s32 4294967295, %s691_s12   ;;  %p553_p0 = scmp.ge.s32.totalorder %s691_s12, 1  ;;  %s691_s12 = sphi %s716_s12, %s13_s12  }
   0x2   : > { %p137_p1 = scmp.lt.s32.totalorder %s691_s12, 3 }
   0x4   : > { %p138_p2 = pnand %p553_p0, %p137_p1 }
   0x5   : > { %p161_p3 = scmp.lt.s32.totalorder (!%p138_p2), %s549_s13, 1  ;;  %s693_s18 = smov (!%p138_p2), 16  }
   0x6   : > { %141 = sbr.rel (%p138_p2) target bundleno = 315 (0x13b), region = 32  ;;  %s694_s19 = smov (!%p138_p2), 48  }
   0x7   : > { %s695_s20 = smov (!%p138_p2), 32  }
   0xb   : > { %s869_s13 = smov (!%p161_p3, %s549_s13), 1  ;;  %vm209_vm0 = vsmask.f32 7424  ;;  %vm315_vm1 = vcmask 1046528   ;;  %vm347_vm2 = vcmask 261120   ;;  %vm335_vm3 = vcmask 130048  }
   0xc   : > { %s670_s14 = smul.u32 44, %s869_s13  ;;  %vm358_vm4 = vcmask 392192   ;;  %vm401_vm5 = vcmask 523264  }
   0xd   : > { %s671_s6 = smul.u32 36, %s869_s13 }
   0xe   : > { %s730_s17 = scalar_lea.vmem %s864_s0, %s670_s14 }
   0xf   : > { %v733_v0 = vld [vmem:[%s730_s17 + $0x18] sm:$0xff]   ;;  %v736_v1 = vld [vmem:[%s730_s17 + $0x20] sm:$0xff]   ;;  %v748_v7 = vld [vmem:[%s730_s17 + $0x10] sm:$0xff]   ;;  %s854_s9 = scalar_lea.vmem %s867_s3, %s671_s6 }
  0x10   : > { %v739_v2 = vld [vmem:[%s730_s17 + $0x24] sm:$0xff]  ;;  %v742_v3 = vunpack.c.l.b16 %v736_v1  ;;  %v234_v4 = vshll.u32 %v733_v0, 16  ;;  %v238_v5 = vshrl.u32 %v733_v0, 16  ;;  %v242_v6 = vshll.u32 %v736_v1, 16  ;;  %v759_v12 = vld [vmem:[%s730_s17 + $0x14] sm:$0xff]   ;;  %v654_v39 = vld [vmem:[%s730_s17 + $0xc] sm:$0xff]  }
  0x11   : > { %v751_v8 = vld [vmem:[%s730_s17] sm:$0xff]   ;;  %v754_v9 = vld [vmem:[%s730_s17 + $0x8] sm:$0xff]   ;;  %v598_v10 = vunpack.c.h.b16 %v733_v0  ;;  %v226_v11 = vshll.u32 %v748_v7, 16  ;;  %v323_v17 = vrot.slane %v739_v2, 1  ;;  %v319_v19 = vrot.slane %v759_v12, 1 }
  0x12   : > { %v236_v13 = vrot.slane %v234_v4, 1  ;;  %v244_v14 = vrot.slane %v242_v6, 1  ;;  %v213_v15 = vshll.u32 %v751_v8, 16  ;;  %v218_v18 = vshll.u32 %v754_v9, 16  ;;  %v652_v27 = vld [vmem:[%s730_s17 + $0x4] sm:$0xff]  }
  0x13   : > { %v264_v16 = vpack.c.b16 %v742_v3, %v598_v10  ;;  %v211_v21 = vshrl.u32 %v751_v8, 16  ;;  %v228_v24 = vrot.slane %v226_v11, 1  ;;  %v230_v25 = vshrl.u32 %v748_v7, 16  ;;  %v582_v11 = vld [vmem:[%s865_s1 + $0x18] sm:$0xff] }
  0x14   : > { %v240_v20 = vor.u32 %v238_v5, %v236_v13  ;;  %v215_v22 = vrot.slane %v213_v15, 1  ;;  %v220_v29 = vrot.slane %v218_v18, 1  ;;  %v282_v33 = vshll.u32 %v759_v12, 16  ;;  %416 = vmatpush.bf16.msra.mxu0 %v582_v11  ;;  %659 = vmatpush.bf16.msra.mxu2 %v582_v11 }
  0x15   : > { %v321_v23 = vrot.slane %v264_v16, 1  ;;  %v290_v32 = vshll.u32 %v264_v16, 16  ;;  %v286_v34 = vshrl.u32 %v759_v12, 16  ;;  %v232_v35 = vor.u32 %v230_v25, %v228_v24  ;;  %660 = vmatpush.bf16.msra.mxu3 %v582_v11  ;;  %658 = vmatpush.bf16.msra.mxu1 %v582_v11  ;;  %v581_v12 = vld [vmem:[%s865_s1 + $0x10] sm:$0xff] }
  0x16   : > { %v245_v26 = vsel %vm209_vm0, %v240_v20, %v244_v14  ;;  %v216_v31 = vor.u32 %v215_v22, %v211_v21  ;;  %v284_v36 = vrot.slane %v282_v33, 1  ;;  %v269_v37 = vshll.u32 %v652_v27, 16 }
  0x17   : > { %255 = vrot.lane.b32.xlu0 %v245_v26, %s693_s18  ;;  %v324_v28 = vsel %vm315_vm1, %v321_v23, %v323_v17  ;;  %v322_v30 = vsel %vm315_vm1, %v319_v19, %v321_v23  ;;  %v298_v38 = vshll.u32 %v739_v2, 16  ;;  %v292_v41 = vrot.slane %v290_v32, 1 }
  0x18   : > { %331 = vrot.lane.b32.xlu1 %v324_v28, %s694_s19  ;;  %329 = vrot.lane.b32.xlu2 %v322_v30, %s694_s19  ;;  %v221_v40 = vsel %vm209_vm0, %v216_v31, %v220_v29  ;;  %v294_v42 = vshrl.u32 %v264_v16, 16  ;;  %v288_v43 = vor.u32 %v286_v34, %v284_v36  ;;  %v237_v44 = vsel %vm209_vm0, %v232_v35, %v236_v13  ;;  %v580_v13 = vld [vmem:[%s865_s1 + $0x8] sm:$0xff] }
  0x19   : > { %v222_v45 = vshrl.u32 %v754_v9, 16  ;;  %v267_v46 = vshrl.u32 %v652_v27, 16  ;;  %v271_v47 = vrot.slane %v269_v37, 1  ;;  %v274_v49 = vshll.u32 %v654_v39, 16  ;;  %417 = vmatpush.bf16.msra.mxu0 %v581_v12  ;;  %662 = vmatpush.bf16.msra.mxu2 %v581_v12 }
  0x1a   : > { %v293_v48 = vsel %vm209_vm0, %v288_v43, %v292_v41  ;;  %v296_v50 = vor.u32 %v294_v42, %v292_v41  ;;  %v300_v51 = vrot.slane %v298_v38, 1  ;;  %v278_v56 = vshrl.u32 %v654_v39, 16  ;;  %663 = vmatpush.bf16.msra.mxu3 %v581_v12  ;;  %661 = vmatpush.bf16.msra.mxu1 %v581_v12  ;;  %v684_v43 = vld [vmem:[%s866_s2 + $0x1] ss:$0 sm:$0xff] }
  0x1b   : > { %v224_v52 = vor.u32 %v222_v45, %v220_v29  ;;  %v272_v53 = vor.u32 %v271_v47, %v267_v46  ;;  %v276_v54 = vrot.slane %v274_v49, 1  ;;  %v246_v59 = vshrl.u32 %v736_v1, 16 }
  0x1c   : > { %v301_v55 = vsel %vm209_vm0, %v296_v50, %v300_v51  ;;  %v316_v61 = vrot.slane %v652_v27, 1  ;;  %v317_v62 = vrot.slane %v654_v39, 1  ;;  %v302_v6 = vshrl.u32 %v739_v2, 16  ;;  %v579_v2 = vld [vmem:[%s865_s1] sm:$0xff] }
  0x1d   : > { %v229_v57 = vsel %vm209_vm0, %v224_v52, %v228_v24  ;;  %v277_v58 = vsel %vm209_vm0, %v272_v53, %v276_v54  ;;  %v280_v60 = vor.u32 %v278_v56, %v276_v54  ;;  %v248_v63 = vor.u32 %v246_v59, %v244_v14  ;;  %418 = vmatpush.bf16.msra.mxu0 %v580_v13 }
  0x1e   : > { %v318_v5 = vsel %vm315_vm1, %v316_v61, %v317_v62  ;;  %v304_v10 = vor.u32 %v302_v6, %v300_v51  ;;  %v320_v1 = vsel %vm315_vm1, %v317_v62, %v319_v19  ;;  %665 = vmatpush.bf16.msra.mxu2 %v580_v13  ;;  %666 = vmatpush.bf16.msra.mxu3 %v580_v13 }
  0x1f   : > { %249 = vrot.lane.b32.xlu0 %v221_v40, %s693_s18  ;;  %v285_v4 = vsel %vm209_vm0, %v280_v60, %v284_v36  ;;  %664 = vmatpush.bf16.msra.mxu1 %v580_v13  ;;  %v205_v33 = vpack.c.b16 %v742_v3, %v742_v3 }
  0x20   : > { %253 = vrot.lane.b32.xlu1 %v237_v44, %s693_s18  ;;  %309 = vrot.lane.b32.xlu2 %v293_v48, %s695_s20 }
  0x21   : > { %419 = vmatpush.bf16.msra.mxu0 %v579_v2 }
  0x22   : > { %668 = vmatpush.bf16.msra.mxu2 %v579_v2  ;;  %669 = vmatpush.bf16.msra.mxu3 %v579_v2 }
  0x23   : > { %667 = vmatpush.bf16.msra.mxu1 %v579_v2 }
  0x27   : > { %311 = vrot.lane.b32.xlu0 %v301_v55, %s695_s20 }
  0x28   : > { %251 = vrot.lane.b32.xlu1 %v229_v57, %s693_s18  ;;  %305 = vrot.lane.b32.xlu2 %v277_v58, %s695_s20 }
  0x2f   : > { %307 = vrot.lane.b32.xlu0 %v285_v4, %s695_s20 }
  0x30   : > { %257 = vrot.lane.b32.xlu1 %v248_v63, %s693_s18  ;;  %325 = vrot.lane.b32.xlu2 %v318_v5, %s694_s19 }
  0x37   : > { %327 = vrot.lane.b32.xlu0 %v320_v1, %s694_s19 }
  0x38   : > { %313 = vrot.lane.b32.xlu1 %v304_v10, %s695_s20  ;;  %333 = vrot.lane.b32.xlu2 %v323_v17, %s694_s19 }
  0x72   : > { %v330_v14 = vpop.permute.xlu2 %329 }
  0x7a   : > { %v310_v15 = vpop.permute.xlu2 %309 }
  0x82   : > { %v306_v16 = vpop.permute.xlu2 %305 }
  0x89   : > { %v256_v17 = vpop.permute.xlu0 %255 }
  0x8a   : > { %v332_v18 = vpop.permute.xlu1 %331  ;;  %v326_v20 = vpop.permute.xlu2 %325  ;;  %v343_v28 = vsel %vm335_vm3, %v733_v0, %v256_v17 }
  0x91   : > { %v250_v19 = vpop.permute.xlu0 %249 }
  0x92   : > { %v254_v21 = vpop.permute.xlu1 %253  ;;  %v337_v22 = vsel %vm335_vm3, %v751_v8, %v250_v19  ;;  %v334_v0 = vpop.permute.xlu2 %333 }
  0x93   : > { %v341_v23 = vsel %vm335_vm3, %v748_v7, %v254_v21  ;;  %v349_v24 = vsel %vm347_vm2, %v337_v22, %v306_v16 }
  0x94   : > { %v360_v25 = vsel %vm358_vm4, %v349_v24, %v326_v20  ;;  %v353_v26 = vsel %vm347_vm2, %v341_v23, %v310_v15 }
  0x95   : > { %572 = vmatmul.msk.bf16.vlgmr.msra.gmra.mxu0 %vm401_vm5, %v360_v25  ;;  %v364_v27 = vsel %vm358_vm4, %v353_v26, %v330_v14 }
  0x96   : > { %574 = vmatmul.msk.bf16.vlgmr.msra.gmra.mxu2 %vm401_vm5, %v364_v27 }
  0x99   : > { %v312_v8 = vpop.permute.xlu0 %311 }
  0x9a   : > { %v252_v29 = vpop.permute.xlu1 %251  ;;  %v355_v30 = vsel %vm347_vm2, %v343_v28, %v312_v8 }
  0x9b   : > { %v366_v7 = vsel %vm358_vm4, %v355_v30, %v332_v18  ;;  %v339_v34 = vsel %vm335_vm3, %v754_v9, %v252_v29  ;;  %v683_v9 = vld [vmem:[%s866_s2] ss:$0 sm:$0xff] }
  0x9c   : > { %575 = vmatmul.msk.bf16.vlgmr.msra.gmra.mxu3 %vm401_vm5, %v366_v7 }
  0xa1   : > { %v308_v31 = vpop.permute.xlu0 %307 }
  0xa2   : > { %v258_v32 = vpop.permute.xlu1 %257  ;;  %v351_v35 = vsel %vm347_vm2, %v339_v34, %v308_v31 }
  0xa3   : > { %v346_v37 = vsel %vm335_vm3, %v205_v33, %v258_v32 }
  0xa9   : > { %v328_v36 = vpop.permute.xlu0 %327 }
  0xaa   : > { %v314_v38 = vpop.permute.xlu1 %313  ;;  %v362_v39 = vsel %vm358_vm4, %v351_v35, %v328_v36 }
  0xab   : > { %v357_v40 = vsel %vm347_vm2, %v346_v37, %v314_v38  ;;  %573 = vmatmul.msk.bf16.vlgmr.msra.gmra.mxu1 %vm401_vm5, %v362_v39 }
  0xac   : > { %v368_v41 = vsel %vm358_vm4, %v357_v40, %v334_v0 }
  0xad   : > { %576 = vmatmul.msk.bf16.gmra.mxu3 %vm401_vm5, %v368_v41 }
 0x112   : > { %v421_v3 = vpop.f32.mrf.mxu0 }
 0x113   : > { %v447_v42 = vmul.f32 %v683_v9, %v421_v3 }
 0x115   : > { %v458_v46 = vadd.f32 %v684_v43, %v447_v42 }
 0x117   : > { %v467_v50 = vmax.f32 %v458_v46, 0.0 }
 0x119   : > { %v431_v44 = vpop.f32.mrf.mxu2 }
 0x11a   : > { %v423_v45 = vpop.f32.mrf.mxu0  ;;  %v451_v49 = vmul.f32 %v683_v9, %v431_v44 }
 0x11b   : > { %v448_v47 = vmul.f32 %v683_v9, %v423_v45 }
 0x11c   : > { %v462_v55 = vadd.f32 %v684_v43, %v451_v49 }
 0x11d   : > { %v459_v48 = vadd.f32 %v684_v43, %v448_v47 }
 0x11e   : > { %v471_v59 = vmax.f32 %v462_v55, 0.0 }
 0x11f   : > { %v468_v51 = vmax.f32 %v459_v48, 0.0  ;;  %v436_v52 = vpop.f32.mrf.mxu3 }
 0x120   : > { %v453_v57 = vmul.f32 %v683_v9, %v436_v52 }
 0x121   : > { %v606_v53 = vpack.c.bf16 %v468_v51, %v467_v50  ;;  %v433_v54 = vpop.f32.mrf.mxu2 }
 0x122   : > { %v452_v56 = vmul.f32 %v683_v9, %v433_v54  ;;  %v464_v62 = vadd.f32 %v684_v43, %v453_v57 }
 0x123   : > { %607 = vst [vmem:[%s854_s9] sm:$0xff] %v606_v53  }
 0x124   : > { %v463_v58 = vadd.f32 %v684_v43, %v452_v56  ;;  %v473_v10 = vmax.f32 %v464_v62, 0.0 }
 0x126   : > { %v472_v60 = vmax.f32 %v463_v58, 0.0 }
 0x127   : > { %v438_v61 = vpop.f32.mrf.mxu3 }
 0x128   : > { %v616_v63 = vpack.c.bf16 %v472_v60, %v471_v59  ;;  %v454_v4 = vmul.f32 %v683_v9, %v438_v61  ;;  %v426_v5 = vpop.f32.mrf.mxu1 }
 0x129   : > { %v449_v11 = vmul.f32 %v683_v9, %v426_v5 }
 0x12a   : > { %648 = vst [vmem:[%s854_s9 + $0x10] sm:$0xff] %v616_v63   ;;  %v465_v6 = vadd.f32 %v684_v43, %v454_v4 }
 0x12b   : > { %v460_v14 = vadd.f32 %v684_v43, %v449_v11 }
 0x12c   : > { %v474_v1 = vmax.f32 %v465_v6, 0.0 }
 0x12d   : > { %v469_v19 = vmax.f32 %v460_v14, 0.0 }
 0x12e   : > { %v621_v12 = vpack.c.bf16 %v474_v1, %v473_v10 }
 0x130   : > { %649 = vst [vmem:[%s854_s9 + $0x18] sm:$0xff] %v621_v12   ;;  %v441_v13 = vpop.f32.mrf.mxu3  ;;  %v428_v2 = vpop.f32.mrf.mxu1 }
 0x131   : > { %v455_v15 = vmul.f32 %v683_v9, %v441_v13  ;;  %v450_v16 = vmul.f32 %v683_v9, %v428_v2 }
 0x133   : > { %v466_v17 = vadd.f32 %v684_v43, %v455_v15  ;;  %v461_v18 = vadd.f32 %v684_v43, %v450_v16 }
 0x135   : > { %v475_v20 = vmax.f32 %v466_v17, 0.0  ;;  %v470_v21 = vmax.f32 %v461_v18, 0.0 }
 0x137   : > { %v484_v22 = vpack.c.bf16 %v475_v20, %v475_v20  ;;  %v611_v23 = vpack.c.bf16 %v470_v21, %v469_v19 }
 0x138   : > { %v443_v24 = vpop.f32.mrf.mxu3 }
 0x139   : > { %493 = vst [vmem:[%s854_s9 + $0x20] sm:$0xf] %v484_v22 }
 0x13a   : > { %647 = vst [vmem:[%s854_s9 + $0x8] sm:$0xff] %v611_v23  }
 0x13b PF: > { %s13_s12 = sadd.s32 1, %s691_s12  }
 0x13c   : > { %p10_p4 = scmp.ge.s32.totalorder %s13_s12, 4  }
 0x13e   :  { %12 = sbr.rel (!%p10_p4) target bundleno = 1 (0x1), region = 62 }

</bundles_post_ra>
